<compile_context>
chip_gen: v7x
topology: tpu7x:2x2x1
jax: 0.10.0
libtpu: 0.0.40
codegen_flags: <defaults>
</compile_context>

<pallas_src>
import jax
import jax.numpy as jnp
from jax.experimental import pallas as pl
from jax.experimental.pallas import tpu as pltpu


_LANE = 128
_VMEM_BLOCK_BUDGET = 4 * 1024 * 1024     # target bytes for one block buffer
_VMEM_LIMIT_BYTES = 48 * 1024 * 1024     # above 16/32 MiB scoped default, < 64 MiB v7x physical
_MAX_UNROLL = 256                        # cap for in-kernel unrolled loops


def _sublane_multiple(dtype):
    itemsize = jnp.dtype(dtype).itemsize
    return max(8, 32 // max(itemsize, 1))      # f32: 8, bf16: 16, int8/fp8: 32


def _fit_tile(dim, mult, cap):
    """Full dim if it fits under `cap`, else the largest multiple of `mult` <= cap."""
    cap = max(cap, mult)
    if dim <= cap:
        return dim
    return max(mult, (cap // mult) * mult)


def _make_index_map(ndim, axis_to_dim):
    """Grid axis g indexes array dim axis_to_dim[g]; every other dim uses block 0."""
    axis_to_dim = tuple(axis_to_dim)

    def index_map(*gidx):
        idx = [0] * ndim
        for d, g in zip(axis_to_dim, gidx):
            idx[d] = g
        return tuple(idx)

    return index_map


# ----------------------------------------------------------------------------
# Kernels
# ----------------------------------------------------------------------------
def _copy_kernel(x_ref, o_ref):
    # Path 1: the permutation lives in the BlockSpec index_maps; straight copy.
    o_ref[...] = x_ref[...]


def _transpose2d_kernel(x_ref, o_ref):
    # Path 2 (2-D arrays): one XLU minor transpose of the tile.
    o_ref[...] = x_ref[...].T


def _make_batched_minor_transpose_kernel(bt):
    # Path 2 (>=3-D): (bt, ts, th) -> (bt, th, ts), short unrolled loop of
    # 2-D XLU transposes so small (S, H) slabs still travel in large DMAs.
    def kernel(x_ref, o_ref):
        for b in range(bt):
            o_ref[b, :, :] = x_ref[b, :, :].T
    return kernel


def _make_major_lane_swap_kernel(ts):
    # Path 3, d1 == ndim-1: (D0, ts, L) -> (L, ts, D0); per-row XLU transposes.
    def kernel(x_ref, o_ref):
        for s in range(ts):
            o_ref[:, s, :] = x_ref[:, s, :].T
    return kernel


def _make_major_sublane_swap_kernel(d0_size, ts):
    # Path 3, d1 == ndim-2: (D0, ts, L) -> (ts, D0, L); lane dim untouched, so
    # full-lane-width contiguous 2-D copies; loop over the smaller extent.
    # TODO(synk): a single sublane-permute op would avoid the unrolled loop.
    if d0_size <= ts:
        def kernel(x_ref, o_ref):
            for d in range(d0_size):
                o_ref[:, d, :] = x_ref[d, :, :]
    else:
        def kernel(x_ref, o_ref):
            for s in range(ts):
                o_ref[s, :, :] = x_ref[:, s, :]
    return kernel


# ----------------------------------------------------------------------------
# Wrapper
# ----------------------------------------------------------------------------
def pallas_transpose(x, dim0, dim1):
    ndim = x.ndim
    d0 = dim0 % ndim
    d1 = dim1 % ndim
    if d0 == d1:
        # torch.transpose(i, i) is the identity: no copy, no kernel.
        return x
    if d0 > d1:
        d0, d1 = d1, d0

    shape = tuple(int(s) for s in x.shape)
    out_shape = list(shape)
    out_shape[d0], out_shape[d1] = out_shape[d1], out_shape[d0]
    out_shape = tuple(out_shape)

    itemsize = jnp.dtype(x.dtype).itemsize
    submult = _sublane_multiple(x.dtype)
    cost = pl.CostEstimate(
        flops=0, transcendentals=0, bytes_accessed=2 * x.size * itemsize
    )

    if d1 <= ndim - 3:
        # ---- Path 1: both swapped dims are major -----------------------------
        folded = {ndim - 1: shape[ndim - 1]}          # lane dim always full
        running = itemsize * shape[ndim - 1]
        grid_other = []

        d_sub = ndim - 2
        if running * shape[d_sub] <= _VMEM_BLOCK_BUDGET:
            folded[d_sub] = shape[d_sub]
        else:
            avail = max(1, _VMEM_BLOCK_BUDGET // running)
            folded[d_sub] = min(shape[d_sub],
                                max(submult, (avail // submult) * submult))
        running *= folded[d_sub]

        for d in range(ndim - 3, -1, -1):
            if d in (d0, d1):
                continue
            if running * shape[d] <= _VMEM_BLOCK_BUDGET:
                folded[d] = shape[d]
                running *= shape[d]
            else:
                grid_other.append(d)                  # squeezed grid axis
        grid_other.sort()
        # TODO(synk): if the lane dim alone blows the budget we still fold it
        # fully (lane constraint) and rely on vmem_limit_bytes.

        row_tiled = folded[d_sub] < shape[d_sub]
        grid = tuple(shape[d] for d in grid_other) + (shape[d0], shape[d1])
        axis_in = list(grid_other) + [d0, d1]
        axis_out = list(grid_other) + [d1, d0]        # DMA-side permute
        if row_tiled:
            grid = grid + (pl.cdiv(shape[d_sub], folded[d_sub]),)
            axis_in.append(d_sub)
            axis_out.append(d_sub)

        blk = tuple(
            None if (d in (d0, d1) or d in grid_other) else folded[d]
            for d in range(ndim)
        )
        in_spec = pl.BlockSpec(blk, _make_index_map(ndim, axis_in))
        out_spec = pl.BlockSpec(blk, _make_index_map(ndim, axis_out))
        kernel = _copy_kernel

    elif d0 == ndim - 2:
        # ---- Path 2: swap of the last two (sublane, lane) dims ---------------
        S, H = shape[-2], shape[-1]
        cap = min(1024, max(512, 2048 // itemsize))   # ~1-2 MiB tiles, dtype-aware
        ts = _fit_tile(S, _LANE, cap)                 # legal in both orientations
        th = _fit_tile(H, _LANE, cap)

        if ndim == 2:
            grid = (pl.cdiv(S, ts), pl.cdiv(H, th))
            in_spec = pl.BlockSpec((ts, th), _make_index_map(2, [0, 1]))
            out_spec = pl.BlockSpec((th, ts), _make_index_map(2, [1, 0]))
            kernel = _transpose2d_kernel
        else:
            slab = max(1, ts * th * itemsize)
            bt = int(max(1, min(shape[-3], _VMEM_BLOCK_BUDGET // slab, 16)))
            lead = list(range(ndim - 3))
            grid = tuple(shape[d] for d in lead) + (
                pl.cdiv(shape[-3], bt), pl.cdiv(S, ts), pl.cdiv(H, th))
            blk_in = tuple([None] * (ndim - 3) + [bt, ts, th])
            blk_out = tuple([None] * (ndim - 3) + [bt, th, ts])
            in_spec = pl.BlockSpec(
                blk_in, _make_index_map(ndim, lead + [ndim - 3, ndim - 2, ndim - 1]))
            out_spec = pl.BlockSpec(
                blk_out, _make_index_map(ndim, lead + [ndim - 3, ndim - 1, ndim - 2]))
            kernel = _make_batched_minor_transpose_kernel(bt)

    else:
        # ---- Path 3: swap a major dim d0 with one of the last two dims -------
        D0 = shape[d0]
        S, L = shape[-2], shape[-1]
        swap_with_lane = (d1 == ndim - 1)

        bytes_per_row = max(1, D0 * L * itemsize)
        cap_rows = max(1, _VMEM_BLOCK_BUDGET // bytes_per_row)
        cap_rows = min(cap_rows, _MAX_UNROLL if swap_with_lane else 512)
        ts = _fit_tile(S, submult, cap_rows)
        # TODO(synk): for extreme D0*L the minimum legal block may exceed the
        # budget; a further tiling of d0 / the lane dim would be needed there.

        others = [d for d in range(ndim) if d not in (d0, ndim - 2, ndim - 1)]
        grid = tuple(shape[d] for d in others) + (pl.cdiv(S, ts),)
        axis_in = others + [ndim - 2]

        blk_in = [None] * ndim
        blk_in[d0] = D0
        blk_in[ndim - 2] = ts
        blk_in[ndim - 1] = L

        blk_out = [None] * ndim
        if swap_with_lane:
            # output dims: d0 -> L (full), -2 -> S (tiled), -1 -> D0 (full)
            blk_out[d0] = L
            blk_out[ndim - 2] = ts
            blk_out[ndim - 1] = D0
            axis_out = others + [ndim - 2]
            kernel = _make_major_lane_swap_kernel(ts)
        else:
            # output dims: d0 -> S (tiled), -2 -> D0 (full), -1 -> L (full)
            blk_out[d0] = ts
            blk_out[ndim - 2] = D0
            blk_out[ndim - 1] = L
            axis_out = others + [d0]
            kernel = _make_major_sublane_swap_kernel(D0, ts)

        in_spec = pl.BlockSpec(tuple(blk_in), _make_index_map(ndim, axis_in))
        out_spec = pl.BlockSpec(tuple(blk_out), _make_index_map(ndim, axis_out))

    return pl.pallas_call(
        kernel,
        out_shape=jax.ShapeDtypeStruct(out_shape, x.dtype),
        grid=grid,
        in_specs=[in_spec],
        out_specs=out_spec,
        compiler_params=pltpu.CompilerParams(
            dimension_semantics=("parallel",) * len(grid),
            vmem_limit_bytes=_VMEM_LIMIT_BYTES,
        ),
        cost_estimate=cost,
    )(x)


class Transpose:
    """JAX/Pallas equivalent of the PyTorch `Transpose` Sequential wrapper."""

    def __init__(self, shape: tuple):
        self.shape = tuple(shape)

    def __call__(self, x):
        return pallas_transpose(x, *self.shape)


# ----------------------------------------------------------------------------
# Demo / self-test
# ----------------------------------------------------------------------------
if __name__ == "__main__":
    key = jax.random.PRNGKey(0)
    k1, k2, k3, k4, k5 = jax.random.split(key, 5)

    # 1) Mixed swap: major dim <-> sublane dim (Path 3, sublane case).
    x = jax.random.normal(k1, (2, 4, 16, 16), dtype=jnp.float32)
    y = jax.block_until_ready(Transpose((1, 2))(x))
    assert y.shape == (2, 16, 4, 16)
    assert bool(jnp.array_equal(y, jnp.swapaxes(x, 1, 2)))

    # 2) Mixed swap: major dim <-> lane dim (Path 3, lane case).
    y2 = jax.block_until_ready(Transpose((1, 3))(x))
    assert y2.shape == (2, 16, 16, 4)
    assert bool(jnp.array_equal(y2, jnp.swapaxes(x, 1, 3)))

    # 3) Minor transpose with small sublane extent (Path 2, batch folded in block).
    x_seq = jax.random.normal(k2, (2, 8, 128), dtype=jnp.float32)
    y_seq = jax.block_until_ready(Transpose((1, 2))(x_seq))
    assert y_seq.shape == (2, 128, 8)
    assert bool(jnp.array_equal(y_seq, jnp.swapaxes(x_seq, 1, 2)))

    # 4) 2-D minor transpose, lane dim tiled (Path 2, grid (1, 2)).
    x_2d = jax.random.normal(k3, (16, 1024), dtype=jnp.float32)
    y_2d = jax.block_until_ready(Transpose((0, 1))(x_2d))
    assert y_2d.shape == (1024, 16)
    assert bool(jnp.array_equal(y_2d, x_2d.T))

    # 5) Both swapped dims major (Path 1: DMA-side permute, fully folded block).
    x_5d = jax.random.normal(k4, (2, 3, 4, 8, 128), dtype=jnp.float32)
    y_5d = jax.block_until_ready(Transpose((0, 1))(x_5d))
    assert y_5d.shape == (3, 2, 4, 8, 128)
    assert bool(jnp.array_equal(y_5d, jnp.swapaxes(x_5d, 0, 1)))

    # 6) bf16 minor transpose (dtype-aware tiling) with negative dims.
    x_bf = jax.random.normal(k5, (4, 16, 128), dtype=jnp.bfloat16)
    y_bf = jax.block_until_ready(Transpose((-2, -1))(x_bf))
    assert y_bf.shape == (4, 128, 16)
    assert bool(jnp.array_equal(y_bf, jnp.swapaxes(x_bf, -2, -1)))

    # 7) Identity swap (no kernel launched).
    assert bool(jnp.array_equal(Transpose((2, 2))(x), x))

    print("KERNEL_OK")
</pallas_src>

<mosaic_0001>
module attributes {stable_mosaic.version = 11 : i64} {
  func.func @kernel(%arg0: i32, %arg1: i32, %arg2: memref<1x4x16x16xf32, #tpu.memory_space<vmem>>, %arg3: memref<1x16x4x16xf32, #tpu.memory_space<vmem>>) attributes {dimension_semantics = [#tpu.dimension_semantics<parallel>, #tpu.dimension_semantics<parallel>], iteration_bounds = array<i64: 2, 1>, scalar_prefetch = 0 : i64, scratch_operands = 0 : i64, tpu.core_type = #tpu.core_type<tc>, window_params = [{transform_indices = @transform_0, window_bounds = array<i64: 1, 4, 16, 16>}, {transform_indices = @transform_1, window_bounds = array<i64: 1, 16, 4, 16>}]} {
    %c0 = arith.constant 0 : index
    %c0_0 = arith.constant 0 : index
    %c0_1 = arith.constant 0 : index
    %c0_2 = arith.constant 0 : index
    %0 = vector.load %arg2[%c0, %c0_0, %c0_1, %c0_2] : memref<1x4x16x16xf32, #tpu.memory_space<vmem>>, vector<1x1x16x16xf32>
    %1 = vector.shape_cast %0 : vector<1x1x16x16xf32> to vector<16x16xf32>
    %c0_3 = arith.constant 0 : index
    %c0_4 = arith.constant 0 : index
    %c0_5 = arith.constant 0 : index
    %c0_6 = arith.constant 0 : index
    %2 = vector.load %arg3[%c0_3, %c0_4, %c0_5, %c0_6] : memref<1x16x4x16xf32, #tpu.memory_space<vmem>>, vector<1x16x1x16xf32>
    %3 = vector.shape_cast %2 : vector<1x16x1x16xf32> to vector<16x16xf32>
    %4 = vector.shape_cast %1 : vector<16x16xf32> to vector<1x16x1x16xf32>
    tpu.vector_store %arg3[%c0_3, %c0_4, %c0_5, %c0_6], %4 {strides = array<i32>} : memref<1x16x4x16xf32, #tpu.memory_space<vmem>>, vector<1x16x1x16xf32>,
    %c0_7 = arith.constant 0 : index
    %c1 = arith.constant 1 : index
    %c0_8 = arith.constant 0 : index
    %c0_9 = arith.constant 0 : index
    %5 = vector.load %arg2[%c0_7, %c1, %c0_8, %c0_9] : memref<1x4x16x16xf32, #tpu.memory_space<vmem>>, vector<1x1x16x16xf32>
    %6 = vector.shape_cast %5 : vector<1x1x16x16xf32> to vector<16x16xf32>
    %c0_10 = arith.constant 0 : index
    %c0_11 = arith.constant 0 : index
    %c1_12 = arith.constant 1 : index
    %c0_13 = arith.constant 0 : index
    %7 = vector.load %arg3[%c0_10, %c0_11, %c1_12, %c0_13] : memref<1x16x4x16xf32, #tpu.memory_space<vmem>>, vector<1x16x1x16xf32>
    %8 = vector.shape_cast %7 : vector<1x16x1x16xf32> to vector<16x16xf32>
    %9 = vector.shape_cast %6 : vector<16x16xf32> to vector<1x16x1x16xf32>
    tpu.vector_store %arg3[%c0_10, %c0_11, %c1_12, %c0_13], %9 {strides = array<i32>} : memref<1x16x4x16xf32, #tpu.memory_space<vmem>>, vector<1x16x1x16xf32>,
    %c0_14 = arith.constant 0 : index
    %c2 = arith.constant 2 : index
    %c0_15 = arith.constant 0 : index
    %c0_16 = arith.constant 0 : index
    %10 = vector.load %arg2[%c0_14, %c2, %c0_15, %c0_16] : memref<1x4x16x16xf32, #tpu.memory_space<vmem>>, vector<1x1x16x16xf32>
    %11 = vector.shape_cast %10 : vector<1x1x16x16xf32> to vector<16x16xf32>
    %c0_17 = arith.constant 0 : index
    %c0_18 = arith.constant 0 : index
    %c2_19 = arith.constant 2 : index
    %c0_20 = arith.constant 0 : index
    %12 = vector.load %arg3[%c0_17, %c0_18, %c2_19, %c0_20] : memref<1x16x4x16xf32, #tpu.memory_space<vmem>>, vector<1x16x1x16xf32>
    %13 = vector.shape_cast %12 : vector<1x16x1x16xf32> to vector<16x16xf32>
    %14 = vector.shape_cast %11 : vector<16x16xf32> to vector<1x16x1x16xf32>
    tpu.vector_store %arg3[%c0_17, %c0_18, %c2_19, %c0_20], %14 {strides = array<i32>} : memref<1x16x4x16xf32, #tpu.memory_space<vmem>>, vector<1x16x1x16xf32>,
    %c0_21 = arith.constant 0 : index
    %c3 = arith.constant 3 : index
    %c0_22 = arith.constant 0 : index
    %c0_23 = arith.constant 0 : index
    %15 = vector.load %arg2[%c0_21, %c3, %c0_22, %c0_23] : memref<1x4x16x16xf32, #tpu.memory_space<vmem>>, vector<1x1x16x16xf32>
    %16 = vector.shape_cast %15 : vector<1x1x16x16xf32> to vector<16x16xf32>
    %c0_24 = arith.constant 0 : index
    %c0_25 = arith.constant 0 : index
    %c3_26 = arith.constant 3 : index
    %c0_27 = arith.constant 0 : index
    %17 = vector.load %arg3[%c0_24, %c0_25, %c3_26, %c0_27] : memref<1x16x4x16xf32, #tpu.memory_space<vmem>>, vector<1x16x1x16xf32>
    %18 = vector.shape_cast %17 : vector<1x16x1x16xf32> to vector<16x16xf32>
    %19 = vector.shape_cast %16 : vector<16x16xf32> to vector<1x16x1x16xf32>
    tpu.vector_store %arg3[%c0_24, %c0_25, %c3_26, %c0_27], %19 {strides = array<i32>} : memref<1x16x4x16xf32, #tpu.memory_space<vmem>>, vector<1x16x1x16xf32>,
    return
  }
  func.func @transform_0(%arg0: i32, %arg1: i32) -> (i32, i32, i32, i32) {
    %c0_i32 = arith.constant 0 : i32
    %c0_i32_0 = arith.constant 0 : i32
    %c0_i32_1 = arith.constant 0 : i32
    return %arg0, %c0_i32, %arg1, %c0_i32_0 : i32, i32, i32, i32
  }
  func.func @transform_1(%arg0: i32, %arg1: i32) -> (i32, i32, i32, i32) {
    %c0_i32 = arith.constant 0 : i32
    %c0_i32_0 = arith.constant 0 : i32
    %c0_i32_1 = arith.constant 0 : i32
    return %arg0, %arg1, %c0_i32, %c0_i32_0 : i32, i32, i32, i32
  }
}

</mosaic_0001>

<bundles_post_ra>
// kernel: tpu_custom_call.1
= control target key start
LH: loop header
LB: loop body
LE: loop exit
PB: predicated region body
PF: predicated region fallthrough
CT: control target
= control target key end

     0   :  { %6 = vsyncpa [#allocation3], 0  ;;  %s1389_s0 = inlined_call_operand.hbm [shape: f32[2,4,16,16], index: 0, kind: input, shape index: {}]   ;;  %s1390_s1 = inlined_call_operand.hbm [shape: f32[2,16,4,16], index: 1, kind: output, shape index: {}]  }
   0x1   :  { %8 = vsyncpa [#allocation3 + $0x1], 0 }
   0x2   :  { %9 = vsyncpa [#allocation4], 0 }
   0x3   :  { %11 = vsyncpa [#allocation4 + $0x1], 0  ;;  %s1019_s6 = smov 0   ;;  %s1021_s7 = smov 0  }
   0x4   :  { %s1023_s8 = smov 0   ;;  %s1025_s9 = smov 0  }
   0x5   :  { %s1027_s10 = smov 0   ;;  %s1029_s11 = smov 0  }
   0x6 LB: > { %s798_s12 = sadd.s32 4294967295, %s1000_s11   ;;  %s799_s13 = sadd.s32 4294967294, %s1000_s11   ;;  %s1000_s11 = sphi %s1029_s11, %s17_s11   ;;  %s996_s10 = sphi %s1027_s10, %s1405_s10   ;;  %s992_s9 = sphi %s1025_s9, %s1404_s9   ;;  %s988_s8 = sphi %s1023_s8, %s1403_s8   ;;  %s984_s7 = sphi %s1021_s7, %s1402_s7   ;;  %s980_s6 = sphi %s1019_s6, %s1401_s6  }
   0x7   : > { %s29_s14 = sadd.s32 1, %s996_s10  ;;  %s38_s15 = sadd.s32 1, %s988_s8 }
   0x8   : > { %p31_p0 = scmp.ge.s32.totalorder %s29_s14, 2  ;;  %p45_p1 = scmp.ne.s32.totalorder %s988_s8, %s984_s7 }
   0x9   : > { %p46_p2 = scmp.eq.s32.totalorder %s1000_s11, 0  ;;  %p51_p3 = scmp.ne.s32.totalorder %s984_s7, %s980_s6 }
   0xa   : > { %s1407_s14 = smov (%p31_p0, %s29_s14), 0  ;;  %p52_p5 = scmp.eq.s32.totalorder %s798_s12, 0 }
   0xb   : > { %p1060_p4 = por %p46_p2, %p45_p1  ;;  %s33_s17 = ssub.s32 %s996_s10, %s1407_s14 }
   0xc   : > { %p77_p6 = scmp.eq.s32.totalorder %s798_s12, 1  ;;  %p36_p7 = scmp.eq.s32.totalorder %s33_s17, 0 }
   0xd   : > { %p1066_p8 = por %p52_p5, %p51_p3  ;;  %p83_p10 = scmp.eq.s32.totalorder %s799_s13, 1 }
   0xe   : > { %p1070_p9 = por %p77_p6, %p45_p1  ;;  %p833_p13 = scmp.lt.s32.totalorder %s1000_s11, 2 }
   0xf   : > { %s1075_s20 = scalar_select %p36_p7, %s988_s8, %s38_s15  }
  0x10   : > { %s1394_s19 = scalar_select %p1070_p9, 1, 0 }
  0x11   : > { %p1077_p11 = por %p83_p10, %p51_p3  ;;  %s103_s22 = sand.u32 1, %s988_s8  }
  0x12   : > { %s802_s23 = sshll.u32 %s103_s22, 6  ;;  %s819_s24 = sshll.u32 %s996_s10, 10 }
  0x13   : > { %s1395_s21 = scalar_select %p1077_p11, 1, 0 }
  0x14   : > { %s1088_s27 = scalar_lea.hbm %s1389_s0, %s819_s24  ;;  %s107_s28 = scalar_lea.vmem [#allocation2], %s802_s23 }
  0x15   : > { %s116_s29 = sshll.u32 %s107_s28, 4  ;;  %p1094_p0 = pnand %p833_p13, %p1060_p4  ;;  %s1090_s29 = int_to_ptr.vmem [resolvable:$true] %s116_s29 }
  0x16   : > { %s1099_s2 = scalar_lea.sflag [#allocation3], %s103_s22  ;;  %s888_s3 = scalar_lea.hbm %s1088_s27, 1024 }
  0x17   : > { %p889_p2 = scmp.ne.s32.totalorder %s1088_s27, %s888_s3  ;;  %p890_p3 = pneg %p1094_p0 }
  0x18   : > { %s893_s12 = scalar_lea.hbm %s1389_s0, 2048  ;;  %p894_p4 = scmp.lt.u32.totalorder %s1088_s27, %s1389_s0 }
  0x19   : > { %p891_p5 = pnand %p890_p3, %p889_p2  ;;  %p895_p7 = scmp.lt.u32.totalorder %s893_s12, %s888_s3 }
  0x1a   : > { %p897_p13 = scmp.lt.u32.totalorder %s888_s3, %s1088_s27 }
  0x1b   : > { %p892_p6 = pneg %p891_p5  ;;  %p896_p10 = por %p895_p7, %p894_p4 }
  0x1d   : > { %p898_p12 = por %p897_p13, %p896_p10 }
  0x1f   : > { %p899_p1 = pnand %p898_p12, %p892_p6 }
  0x21   : > { %902 = shalt.err (!%p899_p1)
}
  0x22   : > { %s903_s16 = scalar_lea.vmem %s1090_s29, 1024  ;;  %s1002_s17 = smov [#allocation2]  }
  0x23   : > { %p904_p2 = scmp.ne.s32.totalorder %s1090_s29, %s903_s16  ;;  %s908_s22 = sshll.u32 %s1002_s17, 4  ;;  %s909_s22 = int_to_ptr.vmem [resolvable:$false] %s908_s22 }
  0x24   : > { %s910_s23 = scalar_lea.vmem %s909_s22, 2048  ;;  %p911_p9 = scmp.lt.s32.totalorder %s1090_s29, %s909_s22 }
  0x25   : > { %p906_p5 = pnand %p904_p2, %p890_p3  ;;  %p912_p4 = scmp.lt.s32.totalorder %s910_s23, %s903_s16 }
  0x27   : > { %p907_p11 = pneg %p906_p5  ;;  %p913_p7 = por %p912_p4, %p911_p9 }
  0x29   : > { %p914_p10 = pnand %p913_p7, %p907_p11 }
  0x2b   : > { %917 = shalt.err (!%p914_p10)
}
  0x2c   : > { %s1003_s24 = smov 128   ;;  %s1004_s25 = smov 8  }
  0x2d   : > { %828 = dma.hbm_to_vmem [thread:$0]  (!%p1094_p0), %s1088_s27, 1024, %s1090_s29, %s1099_s2, %s1003_s24, %s1003_s24, %s1004_s25  }
  0x2e   : > { %p124_p12 = scmp.lt.s32.totalorder %s1000_s11, 3  ;;  %p1397_p1 = scmp.ge.s32.totalorder %s1000_s11, 1 }
  0x30   : > { %p125_p3 = pnand %p1397_p1, %p124_p12 }
  0x31   : > { %s1131_s26 = sand.u32 (!%p125_p3), 1, %s984_s7  }
  0x32   : > { %128 = sbr.rel (%p125_p3) target bundleno = 118 (0x76), region = 24  ;;  %s806_s28 = sshll.u32 (!%p125_p3), %s1131_s26, 6 }
  0x33   : > { %s131_s3 = scalar_lea.sflag (!%p125_p3), [#allocation3], %s1131_s26  ;;  %s1137_s4 = scalar_lea.vmem (!%p125_p3), [#allocation2], %s806_s28 }
  0x39   : > { %971 = dma.done.wait (%p1066_p8), %s131_s3, 1024  }
  0x3a   : > { %973 = vsyncadd (%p1066_p8), %s131_s3, 4294966272  ;;  %v163_v0 = vlaneseq  ;;  %v1005_v1 = vmov 1966171168   ;;  %v155_v6 = vld [vmem:[%s1137_s4] sm:$0xff]  ;;  %vm273_vm0 = vcmask 122880   ;;  %v156_v7 = vld [vmem:[%s1137_s4 + $0x8] sm:$0xff] }
  0x3b   : > { %v161_v2 = vunpack.c.l.s4 %v1005_v1  ;;  %v808_v8 = vld [vmem:[%s1137_s4 + $0x10] sm:$0xff]  ;;  %v159_v10 = vcombine.high %v155_v6, %v155_v6  ;;  %v208_v12 = vcombine.high %v156_v7, %v156_v7  ;;  %v809_v13 = vld [vmem:[%s1137_s4 + $0x18] sm:$0xff]  ;;  %s1160_s18 = scalar_lea.vmem [#allocation5], %s806_s28  ;;  %v810_v42 = vld [vmem:[%s1137_s4 + $0x20] sm:$0xff]  ;;  %s820_s27 = sshll.u32 %s992_s9, 10 }
  0x3c   : > { %v164_v3 = vshrl.u32 %v163_v0, 7  ;;  %v295_v15 = vcombine.high %v808_v8, %v808_v8  ;;  %v344_v17 = vcombine.high %v809_v13, %v809_v13  ;;  %v430_v54 = vcombine.high %v810_v42, %v810_v42  ;;  %v811_v63 = vld [vmem:[%s1137_s4 + $0x28] sm:$0xff]  ;;  %s711_s29 = sshll.u32 %s1160_s18, 4  ;;  %s1332_s5 = scalar_lea.hbm %s1390_s1, %s820_s27  ;;  %s1334_s29 = int_to_ptr.vmem [resolvable:$true] %s711_s29 }
  0x3d   : > { %v162_v4 = vunpack.c.0.s8 %v161_v2  ;;  %s696_s9 = scalar_lea.sflag [#allocation4], %s1131_s26  ;;  %s918_s12 = scalar_lea.vmem %s1334_s29, 1024 }
  0x3e   : > { %p919_p8 = scmp.ne.s32.totalorder %s1334_s29, %s918_s12  ;;  %p1398_p9 = scmp.ne.s32.totalorder %s1394_s19, 0 }
  0x3f   : > { %v1143_v5 = vsub.s32 %v162_v4, %v164_v3  ;;  %v812_v4 = vld [vmem:[%s1137_s4 + $0x30] sm:$0xff]  ;;  %s1006_s13 = smov [#allocation5]  }
  0x40   : > { %p920_p11 = pnand %p919_p8, %p1398_p9  ;;  %s922_s15 = sshll.u32 %s1006_s13, 4  ;;  %s923_s15 = int_to_ptr.vmem [resolvable:$false] %s922_s15 }
  0x41   : > { %v166_v9 = vrot.slane %v155_v6, %v1143_v5  ;;  %v215_v11 = vrot.slane %v156_v7, %v1143_v5  ;;  %v302_v14 = vrot.slane %v808_v8, %v1143_v5  ;;  %v351_v16 = vrot.slane %v809_v13, %v1143_v5  ;;  %s924_s16 = scalar_lea.vmem %s923_s15, 2048  ;;  %p925_p6 = scmp.lt.s32.totalorder %s1334_s29, %s923_s15 }
  0x42   : > { %v173_v20 = vrot.slane %v159_v10, %v1143_v5  ;;  %v222_v23 = vrot.slane %v208_v12, %v1143_v5  ;;  %v309_v45 = vrot.slane %v295_v15, %v1143_v5  ;;  %v358_v49 = vrot.slane %v344_v17, %v1143_v5  ;;  %p921_p0 = pneg %p920_p11  ;;  %p926_p13 = scmp.lt.s32.totalorder %s924_s16, %s918_s12 }
  0x43   : > { %v182_v18 = vrot.slane %v166_v9, %v1143_v5  ;;  %v174_v19 = vcombine.high %v166_v9, %v166_v9  ;;  %v231_v21 = vrot.slane %v215_v11, %v1143_v5  ;;  %v223_v22 = vcombine.high %v215_v11, %v215_v11 }
  0x44   : > { %v318_v24 = vrot.slane %v302_v14, %v1143_v5  ;;  %v310_v25 = vcombine.high %v302_v14, %v302_v14  ;;  %v189_v28 = vrot.slane %v173_v20, %v1143_v5  ;;  %v175_v29 = vcombine.high %v173_v20, %v173_v20  ;;  %p927_p2 = por %p926_p13, %p925_p6 }
  0x45   : > { %274 = vst.msk [vmem:[%s1160_s18] sm:$0x1] %vm273_vm0, %v182_v18  ;;  %v196_v26 = vrot.slane %v174_v19, %v1143_v5  ;;  %v204_v27 = vcombine.high %v182_v18, %v182_v18  ;;  %282 = vst.msk [vmem:[%s1160_s18 + $0x20] sm:$0x1] %vm273_vm0, %v231_v21  ;;  %v245_v30 = vrot.slane %v223_v22, %v1143_v5  ;;  %v813_v22 = vld [vmem:[%s1137_s4 + $0x38] sm:$0xff] }
  0x46   : > { %v253_v31 = vcombine.high %v231_v21, %v231_v21  ;;  %v238_v32 = vrot.slane %v222_v23, %v1143_v5  ;;  %v224_v33 = vcombine.high %v222_v23, %v222_v23  ;;  %409 = vst.msk [vmem:[%s1160_s18 + $0x1] sm:$0x1] %vm273_vm0, %v318_v24  ;;  %278 = vst.msk [vmem:[%s1160_s18 + $0x10] sm:$0x1] %vm273_vm0, %v189_v28  ;;  %p928_p5 = pnand %p927_p2, %p921_p0 }
  0x47   : > { %275 = vst.msk [vmem:[%s1160_s18 + $0x4] sm:$0x1] %vm273_vm0, %v196_v26  ;;  %276 = vst.msk [vmem:[%s1160_s18 + $0x8] sm:$0x1] %vm273_vm0, %v204_v27  ;;  %v206_v34 = vcombine.high %v196_v26, %v196_v26  ;;  %v203_v35 = vrot.slane %v175_v29, %v1143_v5  ;;  %v205_v36 = vcombine.high %v189_v28, %v189_v28 }
  0x48   : > { %v332_v37 = vrot.slane %v310_v25, %v1143_v5  ;;  %283 = vst.msk [vmem:[%s1160_s18 + $0x24] sm:$0x1] %vm273_vm0, %v245_v30  ;;  %284 = vst.msk [vmem:[%s1160_s18 + $0x28] sm:$0x1] %vm273_vm0, %v253_v31  ;;  %v255_v38 = vcombine.high %v245_v30, %v245_v30  ;;  %v252_v39 = vrot.slane %v224_v33, %v1143_v5 }
  0x49   : > { %286 = vst.msk [vmem:[%s1160_s18 + $0x30] sm:$0x1] %vm273_vm0, %v238_v32  ;;  %v254_v40 = vcombine.high %v238_v32, %v238_v32  ;;  %v340_v41 = vcombine.high %v318_v24, %v318_v24  ;;  %277 = vst.msk [vmem:[%s1160_s18 + $0xc] sm:$0x1] %vm273_vm0, %v206_v34  ;;  %v207_v43 = vcombine.high %v203_v35, %v203_v35 }
  0x4a   : > { %279 = vst.msk [vmem:[%s1160_s18 + $0x14] sm:$0x1] %vm273_vm0, %v203_v35  ;;  %280 = vst.msk [vmem:[%s1160_s18 + $0x18] sm:$0x1] %vm273_vm0, %v205_v36  ;;  %v342_v44 = vcombine.high %v332_v37, %v332_v37  ;;  %v367_v46 = vrot.slane %v351_v16, %v1143_v5  ;;  %v256_v47 = vcombine.high %v252_v39, %v252_v39 }
  0x4b   : > { %410 = vst.msk [vmem:[%s1160_s18 + $0x5] sm:$0x1] %vm273_vm0, %v332_v37  ;;  %285 = vst.msk [vmem:[%s1160_s18 + $0x2c] sm:$0x1] %vm273_vm0, %v255_v38  ;;  %v359_v48 = vcombine.high %v351_v16, %v351_v16  ;;  %v437_v50 = vrot.slane %v810_v42, %v1143_v5  ;;  %v325_v51 = vrot.slane %v309_v45, %v1143_v5 }
  0x4c   : > { %287 = vst.msk [vmem:[%s1160_s18 + $0x34] sm:$0x1] %vm273_vm0, %v252_v39  ;;  %288 = vst.msk [vmem:[%s1160_s18 + $0x38] sm:$0x1] %vm273_vm0, %v254_v40  ;;  %v311_v52 = vcombine.high %v309_v45, %v309_v45  ;;  %v389_v53 = vcombine.high %v367_v46, %v367_v46  ;;  %v374_v56 = vrot.slane %v358_v49, %v1143_v5 }
  0x4d   : > { %411 = vst.msk [vmem:[%s1160_s18 + $0x9] sm:$0x1] %vm273_vm0, %v340_v41  ;;  %281 = vst.msk [vmem:[%s1160_s18 + $0x1c] sm:$0x1] %vm273_vm0, %v207_v43  ;;  %v381_v55 = vrot.slane %v359_v48, %v1143_v5  ;;  %v360_v57 = vcombine.high %v358_v49, %v358_v49  ;;  %v453_v58 = vrot.slane %v437_v50, %v1143_v5 }
  0x4e   : > { %412 = vst.msk [vmem:[%s1160_s18 + $0xd] sm:$0x1] %vm273_vm0, %v342_v44  ;;  %417 = vst.msk [vmem:[%s1160_s18 + $0x21] sm:$0x1] %vm273_vm0, %v367_v46  ;;  %v339_v59 = vrot.slane %v311_v52, %v1143_v5  ;;  %v341_v60 = vcombine.high %v325_v51, %v325_v51  ;;  %v445_v61 = vcombine.high %v437_v50, %v437_v50 }
  0x4f   : > { %289 = vst.msk [vmem:[%s1160_s18 + $0x3c] sm:$0x1] %vm273_vm0, %v256_v47  ;;  %413 = vst.msk [vmem:[%s1160_s18 + $0x11] sm:$0x1] %vm273_vm0, %v325_v51  ;;  %v444_v62 = vrot.slane %v430_v54, %v1143_v5  ;;  %v391_v0 = vcombine.high %v381_v55, %v381_v55  ;;  %v388_v1 = vrot.slane %v360_v57, %v1143_v5 }
  0x50   : > { %419 = vst.msk [vmem:[%s1160_s18 + $0x29] sm:$0x1] %vm273_vm0, %v389_v53  ;;  %418 = vst.msk [vmem:[%s1160_s18 + $0x25] sm:$0x1] %vm273_vm0, %v381_v55  ;;  %v390_v2 = vcombine.high %v374_v56, %v374_v56  ;;  %v475_v3 = vcombine.high %v453_v58, %v453_v58  ;;  %v343_v6 = vcombine.high %v339_v59, %v339_v59 }
  0x51   : > { %421 = vst.msk [vmem:[%s1160_s18 + $0x31] sm:$0x1] %vm273_vm0, %v374_v56  ;;  %544 = vst.msk [vmem:[%s1160_s18 + $0x2] sm:$0x1] %vm273_vm0, %v453_v58  ;;  %v467_v7 = vrot.slane %v445_v61, %v1143_v5  ;;  %v460_v8 = vrot.slane %v444_v62, %v1143_v5  ;;  %v446_v9 = vcombine.high %v444_v62, %v444_v62 }
  0x52   : > { %414 = vst.msk [vmem:[%s1160_s18 + $0x15] sm:$0x1] %vm273_vm0, %v339_v59  ;;  %415 = vst.msk [vmem:[%s1160_s18 + $0x19] sm:$0x1] %vm273_vm0, %v341_v60  ;;  %v392_v10 = vcombine.high %v388_v1, %v388_v1  ;;  %v486_v11 = vrot.slane %v811_v63, %v1143_v5  ;;  %v479_v12 = vcombine.high %v811_v63, %v811_v63 }
  0x53   : > { %420 = vst.msk [vmem:[%s1160_s18 + $0x2d] sm:$0x1] %vm273_vm0, %v391_v0  ;;  %422 = vst.msk [vmem:[%s1160_s18 + $0x35] sm:$0x1] %vm273_vm0, %v388_v1  ;;  %v572_v13 = vrot.slane %v812_v4, %v1143_v5  ;;  %v477_v14 = vcombine.high %v467_v7, %v467_v7  ;;  %v474_v15 = vrot.slane %v446_v9, %v1143_v5 }
  0x54   : > { %423 = vst.msk [vmem:[%s1160_s18 + $0x39] sm:$0x1] %vm273_vm0, %v390_v2  ;;  %546 = vst.msk [vmem:[%s1160_s18 + $0xa] sm:$0x1] %vm273_vm0, %v475_v3  ;;  %v476_v16 = vcombine.high %v460_v8, %v460_v8  ;;  %v565_v17 = vcombine.high %v812_v4, %v812_v4  ;;  %v502_v18 = vrot.slane %v486_v11, %v1143_v5 }
  0x55   : > { %416 = vst.msk [vmem:[%s1160_s18 + $0x1d] sm:$0x1] %vm273_vm0, %v343_v6  ;;  %545 = vst.msk [vmem:[%s1160_s18 + $0x6] sm:$0x1] %vm273_vm0, %v467_v7  ;;  %v494_v19 = vcombine.high %v486_v11, %v486_v11  ;;  %v493_v20 = vrot.slane %v479_v12, %v1143_v5  ;;  %v588_v21 = vrot.slane %v572_v13, %v1143_v5 }
  0x56   : > { %548 = vst.msk [vmem:[%s1160_s18 + $0x12] sm:$0x1] %vm273_vm0, %v460_v8  ;;  %424 = vst.msk [vmem:[%s1160_s18 + $0x3d] sm:$0x1] %vm273_vm0, %v392_v10  ;;  %v478_v23 = vcombine.high %v474_v15, %v474_v15  ;;  %v580_v24 = vcombine.high %v572_v13, %v572_v13  ;;  %v579_v25 = vrot.slane %v565_v17, %v1143_v5 }
  0x57   : > { %547 = vst.msk [vmem:[%s1160_s18 + $0xe] sm:$0x1] %vm273_vm0, %v477_v14  ;;  %549 = vst.msk [vmem:[%s1160_s18 + $0x16] sm:$0x1] %vm273_vm0, %v474_v15  ;;  %v621_v26 = vrot.slane %v813_v22, %v1143_v5  ;;  %v516_v27 = vrot.slane %v494_v19, %v1143_v5  ;;  %v524_v28 = vcombine.high %v502_v18, %v502_v18 }
  0x58   : > { %550 = vst.msk [vmem:[%s1160_s18 + $0x1a] sm:$0x1] %vm273_vm0, %v476_v16  ;;  %552 = vst.msk [vmem:[%s1160_s18 + $0x22] sm:$0x1] %vm273_vm0, %v502_v18  ;;  %v509_v29 = vrot.slane %v493_v20, %v1143_v5  ;;  %v495_v30 = vcombine.high %v493_v20, %v493_v20  ;;  %v602_v31 = vrot.slane %v580_v24, %v1143_v5 }
  0x59   : > { %679 = vst.msk [vmem:[%s1160_s18 + $0x3] sm:$0x1] %vm273_vm0, %v588_v21  ;;  %551 = vst.msk [vmem:[%s1160_s18 + $0x1e] sm:$0x1] %vm273_vm0, %v478_v23  ;;  %v610_v32 = vcombine.high %v588_v21, %v588_v21  ;;  %v595_v33 = vrot.slane %v579_v25, %v1143_v5  ;;  %v581_v34 = vcombine.high %v579_v25, %v579_v25 }
  0x5a   : > { %553 = vst.msk [vmem:[%s1160_s18 + $0x26] sm:$0x1] %vm273_vm0, %v516_v27  ;;  %554 = vst.msk [vmem:[%s1160_s18 + $0x2a] sm:$0x1] %vm273_vm0, %v524_v28  ;;  %v526_v35 = vcombine.high %v516_v27, %v516_v27  ;;  %v523_v36 = vrot.slane %v495_v30, %v1143_v5  ;;  %v525_v37 = vcombine.high %v509_v29, %v509_v29 }
  0x5b   : > { %556 = vst.msk [vmem:[%s1160_s18 + $0x32] sm:$0x1] %vm273_vm0, %v509_v29  ;;  %v637_v38 = vrot.slane %v621_v26, %v1143_v5  ;;  %680 = vst.msk [vmem:[%s1160_s18 + $0x7] sm:$0x1] %vm273_vm0, %v602_v31  ;;  %v612_v39 = vcombine.high %v602_v31, %v602_v31  ;;  %v609_v40 = vrot.slane %v581_v34, %v1143_v5 }
  0x5c   : > { %681 = vst.msk [vmem:[%s1160_s18 + $0xb] sm:$0x1] %vm273_vm0, %v610_v32  ;;  %683 = vst.msk [vmem:[%s1160_s18 + $0x13] sm:$0x1] %vm273_vm0, %v595_v33  ;;  %v611_v41 = vcombine.high %v595_v33, %v595_v33  ;;  %v629_v42 = vcombine.high %v621_v26, %v621_v26  ;;  %v527_v43 = vcombine.high %v523_v36, %v523_v36 }
  0x5d   : > { %555 = vst.msk [vmem:[%s1160_s18 + $0x2e] sm:$0x1] %vm273_vm0, %v526_v35  ;;  %557 = vst.msk [vmem:[%s1160_s18 + $0x36] sm:$0x1] %vm273_vm0, %v523_v36  ;;  %v659_v44 = vcombine.high %v637_v38, %v637_v38  ;;  %v614_v45 = vcombine.high %v813_v22, %v813_v22  ;;  %v613_v46 = vcombine.high %v609_v40, %v609_v40 }
  0x5e   : > { %558 = vst.msk [vmem:[%s1160_s18 + $0x3a] sm:$0x1] %vm273_vm0, %v525_v37  ;;  %687 = vst.msk [vmem:[%s1160_s18 + $0x23] sm:$0x1] %vm273_vm0, %v637_v38  ;;  %v651_v47 = vrot.slane %v629_v42, %v1143_v5 }
  0x5f   : > { %682 = vst.msk [vmem:[%s1160_s18 + $0xf] sm:$0x1] %vm273_vm0, %v612_v39  ;;  %684 = vst.msk [vmem:[%s1160_s18 + $0x17] sm:$0x1] %vm273_vm0, %v609_v40  ;;  %v628_v48 = vrot.slane %v614_v45, %v1143_v5 }
  0x60   : > { %685 = vst.msk [vmem:[%s1160_s18 + $0x1b] sm:$0x1] %vm273_vm0, %v611_v41  ;;  %559 = vst.msk [vmem:[%s1160_s18 + $0x3e] sm:$0x1] %vm273_vm0, %v527_v43  ;;  %v661_v49 = vcombine.high %v651_v47, %v651_v47 }
  0x61   : > { %689 = vst.msk [vmem:[%s1160_s18 + $0x2b] sm:$0x1] %vm273_vm0, %v659_v44  ;;  %686 = vst.msk [vmem:[%s1160_s18 + $0x1f] sm:$0x1] %vm273_vm0, %v613_v46  ;;  %v644_v50 = vrot.slane %v628_v48, %v1143_v5  ;;  %v630_v51 = vcombine.high %v628_v48, %v628_v48 }
  0x62   : > { %688 = vst.msk [vmem:[%s1160_s18 + $0x27] sm:$0x1] %vm273_vm0, %v651_v47  ;;  %690 = vst.msk [vmem:[%s1160_s18 + $0x2f] sm:$0x1] %vm273_vm0, %v661_v49 }
  0x63   : > { %691 = vst.msk [vmem:[%s1160_s18 + $0x33] sm:$0x1] %vm273_vm0, %v644_v50  ;;  %v658_v52 = vrot.slane %v630_v51, %v1143_v5  ;;  %v660_v53 = vcombine.high %v644_v50, %v644_v50 }
  0x65   : > { %692 = vst.msk [vmem:[%s1160_s18 + $0x37] sm:$0x1] %vm273_vm0, %v658_v52  ;;  %693 = vst.msk [vmem:[%s1160_s18 + $0x3b] sm:$0x1] %vm273_vm0, %v660_v53  ;;  %v662_v54 = vcombine.high %v658_v52, %v658_v52 }
  0x67   : > { %694 = vst.msk [vmem:[%s1160_s18 + $0x3f] sm:$0x1] %vm273_vm0, %v662_v54 }
  0x68   : > { %931 = shalt.err (!%p928_p5)
}
  0x69   : > { %s932_s17 = scalar_lea.hbm %s1332_s5, 1024  ;;  %s936_s24 = scalar_lea.hbm %s1390_s1, 2048 }
  0x6a   : > { %p933_p4 = scmp.ne.s32.totalorder %s1332_s5, %s932_s17  ;;  %p937_p12 = scmp.lt.u32.totalorder %s1332_s5, %s1390_s1 }
  0x6b   : > { %p938_p1 = scmp.lt.u32.totalorder %s936_s24, %s932_s17  ;;  %p940_p8 = scmp.lt.u32.totalorder %s932_s17, %s1332_s5 }
  0x6c   : > { %p934_p7 = pnand %p933_p4, %p1398_p9 }
  0x6d   : > { %p939_p3 = por %p938_p1, %p937_p12 }
  0x6e   : > { %p935_p10 = pneg %p934_p7 }
  0x6f   : > { %p941_p11 = por %p940_p8, %p939_p3 }
  0x71   : > { %p942_p0 = pnand %p941_p11, %p935_p10 }
  0x73   : > { %945 = shalt.err (!%p942_p0)
}
  0x74   : > { %s1007_s3 = smov 64   ;;  %s1008_s4 = smov 4  }
  0x75   : > { %823 = dma.vmem_to_hbm [thread:$0]  (%p1398_p9), %s1334_s29, 1024, %s1332_s5, %s696_s9, %s1007_s3, %s1007_s3, %s1008_s4  }
  0x76 PF: > { %s726_s18 = sand.u32 1, %s980_s6   ;;  %p1399_p6 = scmp.ne.s32.totalorder %s1395_s21, 0 }
  0x77   : > { %p1400_p13 = scmp.ge.s32.totalorder %s1000_s11, 2  ;;  %s727_s27 = scalar_lea.sflag [#allocation4], %s726_s18 }
  0x79   : > { %p830_p2 = pnand %p1400_p13, %p1399_p6 }
  0x7b   : > { %975 = dma.done.wait (!%p830_p2), %s727_s27, 1024  }
  0x7c   : > { %977 = vsyncadd (!%p830_p2), %s727_s27, 4294966272  ;;  %s17_s11 = sadd.s32 1, %s1000_s11   ;;  %s1401_s6 = smov %s984_s7 }
  0x7d   : > { %p14_p5 = scmp.ge.s32.totalorder %s17_s11, 4   ;;  %s1402_s7 = smov %s988_s8 }
  0x7e   : > { %s1403_s8 = smov %s1075_s20  ;;  %s1404_s9 = smov %s996_s10 }
  0x7f   : > { %s1405_s10 = smov %s1407_s14  ;;  %16 = sbr.rel (!%p14_p5) target bundleno = 6 (0x6), region = 72 }
  0x86   :  { %732 = vsyncpa [#allocation3], 1 }
  0x87   :  { %734 = vsyncpa [#allocation3 + $0x1], 1 }
  0x88   :  { %735 = vsyncpa [#allocation4], 1 }
  0x89   :  { %737 = vsyncpa [#allocation4 + $0x1], 1 }

</bundles_post_ra>
